<compile_context>
chip_gen: v7x
topology: tpu7x:2x2x1
jax: 0.10.0
libtpu: 0.0.40
codegen_flags: <defaults>
</compile_context>

<pallas_src>
import math
from functools import partial

import jax
import jax.numpy as jnp
from jax.experimental import pallas as pl
from jax.experimental.pallas import tpu as pltpu

_H1 = 256   # fc1 width
_H2 = 128   # fc2 width


def _round_up(x, m):
    return ((x + m - 1) // m) * m


def _cdiv(a, b):
    return -(-a // b)


def actor_kernel(x_ref, w1_ref, b1_ref, w2_ref, b2_ref, w3_ref, b3_ref, o_ref):
    """Fused 3-layer MLP tile: tanh(relu(relu(x@W1+b1)@W2+b2)@W3+b3).

    Weights are bf16; MXU accumulates in f32; all elementwise math is f32.
    """
    x = x_ref[...].astype(jnp.bfloat16)

    h1 = jnp.dot(x, w1_ref[...], preferred_element_type=jnp.float32) + b1_ref[...]
    h1 = jnp.maximum(h1, 0.0)

    h2 = jnp.dot(h1.astype(jnp.bfloat16), w2_ref[...],
                 preferred_element_type=jnp.float32) + b2_ref[...]
    h2 = jnp.maximum(h2, 0.0)

    h3 = jnp.dot(h2.astype(jnp.bfloat16), w3_ref[...],
                 preferred_element_type=jnp.float32) + b3_ref[...]
    o_ref[...] = jnp.tanh(h3).astype(o_ref.dtype)


def _tiling(B, batch_tile):
    """Pick (TB, B_pad, n_tiles): big tiles to amortize grid-step overhead, but
    >= 2 steps for large batches so the v7x megacore can shard the grid, and at
    most 7 + (TB - 1 within-rounding) padded rows instead of up to batch_tile-1."""
    B_al = _round_up(max(B, 1), 8)
    n_tiles = max(1, _cdiv(B_al, batch_tile))
    if n_tiles == 1 and B_al >= 1024:      # enough work to split across 2 cores
        n_tiles = 2
    TB = _round_up(_cdiv(B_al, n_tiles), 8)
    B_pad = n_tiles * TB
    return TB, B_pad, n_tiles


def actor_forward(state, params, *, batch_tile=2048):
    """state: (B, state_size) f32.
    params: kernel-ready params from prepare_actor_params() --
            bf16 (in,out) weights, f32 (1,out) biases."""
    w1, b1 = params["w1"], params["b1"]
    w2, b2 = params["w2"], params["b2"]
    w3, b3 = params["w3"], params["b3"]

    B, S = state.shape
    N = w3.shape[1]

    TB, B_pad, n_tiles = _tiling(B, batch_tile)

    if B_pad == B:
        # No staging copy at all: kernel reads f32 rows straight from HBM.
        x_in = state
    else:
        # Batch-pad copy is unavoidable -> store it in bf16 (kernel casts anyway).
        x_in = jnp.zeros((B_pad, S), jnp.bfloat16).at[:B, :].set(
            state.astype(jnp.bfloat16))

    flops = 2 * B_pad * (S * _H1 + _H1 * _H2 + _H2 * N)
    bytes_accessed = (
        x_in.size * x_in.dtype.itemsize          # input activations
        + B_pad * N * 4                          # narrow f32 output
        + (w1.size + w2.size + w3.size) * 2      # bf16 weights (read once)
        + (b1.size + b2.size + b3.size) * 4      # f32 biases
    )
    cost = pl.CostEstimate(flops=flops,
                           transcendentals=B_pad * N,   # tanh
                           bytes_accessed=bytes_accessed)

    out = pl.pallas_call(
        actor_kernel,
        out_shape=jax.ShapeDtypeStruct((B_pad, N), jnp.float32),
        grid_spec=pltpu.PrefetchScalarGridSpec(
            num_scalar_prefetch=0,
            grid=(n_tiles,),
            in_specs=[
                pl.BlockSpec((TB, S), lambda i: (i, 0)),     # x: tiled over batch
                pl.BlockSpec((S, _H1), lambda i: (0, 0)),    # W1 (VMEM-resident)
                pl.BlockSpec((1, _H1), lambda i: (0, 0)),    # b1
                pl.BlockSpec((_H1, _H2), lambda i: (0, 0)),  # W2
                pl.BlockSpec((1, _H2), lambda i: (0, 0)),    # b2
                pl.BlockSpec((_H2, N), lambda i: (0, 0)),    # W3 (narrow, full dim)
                pl.BlockSpec((1, N), lambda i: (0, 0)),      # b3
            ],
            out_specs=pl.BlockSpec((TB, N), lambda i: (i, 0)),
        ),
        compiler_params=pltpu.CompilerParams(
            dimension_semantics=("parallel",)),              # megacore on v7x
        cost_estimate=cost,
    )(x_in, w1, b1, w2, b2, w3, b3)

    return out[:B, :]


def init_actor_params(key, state_size, action_size):
    """f32 init mimicking PyTorch nn.Linear default U[-1/sqrt(fan_in), +...]."""
    def linear(k, fan_in, fan_out):
        kw, kb = jax.random.split(k)
        bound = 1.0 / math.sqrt(fan_in)
        w = jax.random.uniform(kw, (fan_in, fan_out), jnp.float32, -bound, bound)
        b = jax.random.uniform(kb, (1, fan_out), jnp.float32, -bound, bound)
        return w, b

    k1, k2, k3 = jax.random.split(key, 3)
    w1, b1 = linear(k1, state_size, _H1)
    w2, b2 = linear(k2, _H1, _H2)
    w3, b3 = linear(k3, _H2, action_size)
    return {"w1": w1, "b1": b1, "w2": w2, "b2": b2, "w3": w3, "b3": b3}


def prepare_actor_params(params):
    """One-time preprocessing (hoisted out of the per-call forward):
    cast weights to bf16; biases stay f32 with shape (1, out)."""
    return {
        "w1": params["w1"].astype(jnp.bfloat16),
        "b1": params["b1"].astype(jnp.float32),
        "w2": params["w2"].astype(jnp.bfloat16),
        "b2": params["b2"].astype(jnp.float32),
        "w3": params["w3"].astype(jnp.bfloat16),
        "b3": params["b3"].astype(jnp.float32),
    }


if __name__ == "__main__":
    key = jax.random.PRNGKey(0)
    k_params, k_state = jax.random.split(key)

    batch = 8
    state_size = 32
    action_size = 4

    params = init_actor_params(k_params, state_size, action_size)
    kparams = jax.block_until_ready(prepare_actor_params(params))  # once, at init
    state = jax.random.normal(k_state, (batch, state_size), jnp.float32)

    fwd = jax.jit(partial(actor_forward, batch_tile=2048))
    actions = fwd(state, kparams)
    jax.block_until_ready(actions)

    # Reference matching the kernel's numerics: bf16 weights/activations into the
    # dot, f32 accumulation, f32 elementwise.
    def _dot(a, w):
        return jnp.dot(a.astype(jnp.bfloat16), w.astype(jnp.bfloat16),
                       preferred_element_type=jnp.float32)

    h1 = jnp.maximum(_dot(state, params["w1"]) + params["b1"], 0.0)
    h2 = jnp.maximum(_dot(h1, params["w2"]) + params["b2"], 0.0)
    ref = jnp.tanh(_dot(h2, params["w3"]) + params["b3"])

    assert actions.shape == (batch, action_size)
    assert jnp.allclose(actions, ref, atol=2e-3), "mismatch vs JAX reference"

    print("KERNEL_OK")
</pallas_src>

<mosaic_0001>
module attributes {stable_mosaic.version = 11 : i64} {
  func.func @actor_kernel(%arg0: i32, %arg1: memref<8x32xf32, #tpu.memory_space<vmem>>, %arg2: memref<32x256xbf16, #tpu.memory_space<vmem>>, %arg3: memref<1x256xf32, #tpu.memory_space<vmem>>, %arg4: memref<256x128xbf16, #tpu.memory_space<vmem>>, %arg5: memref<1x128xf32, #tpu.memory_space<vmem>>, %arg6: memref<128x4xbf16, #tpu.memory_space<vmem>>, %arg7: memref<1x4xf32, #tpu.memory_space<vmem>>, %arg8: memref<8x4xf32, #tpu.memory_space<vmem>>) attributes {dimension_semantics = [#tpu.dimension_semantics<parallel>], iteration_bounds = array<i64: 1>, scalar_prefetch = 0 : i64, scratch_operands = 0 : i64, tpu.core_type = #tpu.core_type<tc>, window_params = [{transform_indices = @transform_0, window_bounds = array<i64: 8, 32>}, {pipeline_mode = #tpu.pipeline_mode<synchronous>, transform_indices = @transform_1, window_bounds = array<i64: 32, 256>}, {pipeline_mode = #tpu.pipeline_mode<synchronous>, transform_indices = @transform_2, window_bounds = array<i64: 1, 256>}, {pipeline_mode = #tpu.pipeline_mode<synchronous>, transform_indices = @transform_3, window_bounds = array<i64: 256, 128>}, {pipeline_mode = #tpu.pipeline_mode<synchronous>, transform_indices = @transform_4, window_bounds = array<i64: 1, 128>}, {pipeline_mode = #tpu.pipeline_mode<synchronous>, transform_indices = @transform_5, window_bounds = array<i64: 128, 4>}, {pipeline_mode = #tpu.pipeline_mode<synchronous>, transform_indices = @transform_6, window_bounds = array<i64: 1, 4>}, {transform_indices = @transform_7, window_bounds = array<i64: 8, 4>}]} {
    %c0 = arith.constant 0 : index
    %c0_0 = arith.constant 0 : index
    %0 = vector.load %arg1[%c0, %c0_0] : memref<8x32xf32, #tpu.memory_space<vmem>>, vector<8x32xf32>
    %1 = arith.truncf %0 : vector<8x32xf32> to vector<8x32xbf16>
    %c0_1 = arith.constant 0 : index
    %c0_2 = arith.constant 0 : index
    %2 = vector.load %arg2[%c0_1, %c0_2] : memref<32x256xbf16, #tpu.memory_space<vmem>>, vector<32x256xbf16>
    %cst = arith.constant dense<0.000000e+00> : vector<8x256xf32>
    %3 = tpu.matmul %1, %2, %cst {dimension_numbers = #tpu.dot_dimension_numbers<[1], [0], [0], [1], [0, 0, 1, 1], [], []>} : vector<8x32xbf16>, vector<32x256xbf16>, vector<8x256xf32> -> vector<8x256xf32>
    %c0_3 = arith.constant 0 : index
    %c0_4 = arith.constant 0 : index
    %4 = vector.load %arg3[%c0_3, %c0_4] : memref<1x256xf32, #tpu.memory_space<vmem>>, vector<1x256xf32>
    %5 = vector.broadcast %4 : vector<1x256xf32> to vector<8x256xf32>
    %6 = arith.addf %3, %5 : vector<8x256xf32>
    %cst_5 = arith.constant 0.000000e+00 : f32
    %7 = vector.broadcast %cst_5 : f32 to vector<8x256xf32>
    %8 = arith.maximumf %6, %7 : vector<8x256xf32>
    %9 = arith.truncf %8 : vector<8x256xf32> to vector<8x256xbf16>
    %c0_6 = arith.constant 0 : index
    %c0_7 = arith.constant 0 : index
    %10 = vector.load %arg4[%c0_6, %c0_7] : memref<256x128xbf16, #tpu.memory_space<vmem>>, vector<256x128xbf16>
    %cst_8 = arith.constant dense<0.000000e+00> : vector<8x128xf32>
    %11 = tpu.matmul %9, %10, %cst_8 {dimension_numbers = #tpu.dot_dimension_numbers<[1], [0], [0], [1], [0, 0, 1, 1], [], []>} : vector<8x256xbf16>, vector<256x128xbf16>, vector<8x128xf32> -> vector<8x128xf32>
    %c0_9 = arith.constant 0 : index
    %c0_10 = arith.constant 0 : index
    %12 = vector.load %arg5[%c0_9, %c0_10] : memref<1x128xf32, #tpu.memory_space<vmem>>, vector<1x128xf32>
    %13 = vector.broadcast %12 : vector<1x128xf32> to vector<8x128xf32>
    %14 = arith.addf %11, %13 : vector<8x128xf32>
    %cst_11 = arith.constant 0.000000e+00 : f32
    %15 = vector.broadcast %cst_11 : f32 to vector<8x128xf32>
    %16 = arith.maximumf %14, %15 : vector<8x128xf32>
    %17 = arith.truncf %16 : vector<8x128xf32> to vector<8x128xbf16>
    %c0_12 = arith.constant 0 : index
    %c0_13 = arith.constant 0 : index
    %18 = vector.load %arg6[%c0_12, %c0_13] : memref<128x4xbf16, #tpu.memory_space<vmem>>, vector<128x4xbf16>
    %cst_14 = arith.constant dense<0.000000e+00> : vector<8x4xf32>
    %19 = tpu.matmul %17, %18, %cst_14 {dimension_numbers = #tpu.dot_dimension_numbers<[1], [0], [0], [1], [0, 0, 1, 1], [], []>} : vector<8x128xbf16>, vector<128x4xbf16>, vector<8x4xf32> -> vector<8x4xf32>
    %c0_15 = arith.constant 0 : index
    %c0_16 = arith.constant 0 : index
    %20 = vector.load %arg7[%c0_15, %c0_16] : memref<1x4xf32, #tpu.memory_space<vmem>>, vector<1x4xf32>
    %21 = vector.broadcast %20 : vector<1x4xf32> to vector<8x4xf32>
    %22 = arith.addf %19, %21 : vector<8x4xf32>
    %23 = math.tanh %22 : vector<8x4xf32>
    %c0_17 = arith.constant 0 : index
    %c0_18 = arith.constant 0 : index
    %24 = vector.load %arg8[%c0_17, %c0_18] : memref<8x4xf32, #tpu.memory_space<vmem>>, vector<8x4xf32>
    tpu.vector_store %arg8[%c0_17, %c0_18], %23 {strides = array<i32>} : memref<8x4xf32, #tpu.memory_space<vmem>>, vector<8x4xf32>,
    return
  }
  func.func @transform_0(%arg0: i32) -> (i32, i32) {
    %c0_i32 = arith.constant 0 : i32
    %c0_i32_0 = arith.constant 0 : i32
    return %arg0, %c0_i32 : i32, i32
  }
  func.func @transform_1(%arg0: i32) -> (i32, i32) {
    %c0_i32 = arith.constant 0 : i32
    %c0_i32_0 = arith.constant 0 : i32
    %c0_i32_1 = arith.constant 0 : i32
    return %c0_i32, %c0_i32_0 : i32, i32
  }
  func.func @transform_2(%arg0: i32) -> (i32, i32) {
    %c0_i32 = arith.constant 0 : i32
    %c0_i32_0 = arith.constant 0 : i32
    %c0_i32_1 = arith.constant 0 : i32
    return %c0_i32, %c0_i32_0 : i32, i32
  }
  func.func @transform_3(%arg0: i32) -> (i32, i32) {
    %c0_i32 = arith.constant 0 : i32
    %c0_i32_0 = arith.constant 0 : i32
    %c0_i32_1 = arith.constant 0 : i32
    return %c0_i32, %c0_i32_0 : i32, i32
  }
  func.func @transform_4(%arg0: i32) -> (i32, i32) {
    %c0_i32 = arith.constant 0 : i32
    %c0_i32_0 = arith.constant 0 : i32
    %c0_i32_1 = arith.constant 0 : i32
    return %c0_i32, %c0_i32_0 : i32, i32
  }
  func.func @transform_5(%arg0: i32) -> (i32, i32) {
    %c0_i32 = arith.constant 0 : i32
    %c0_i32_0 = arith.constant 0 : i32
    %c0_i32_1 = arith.constant 0 : i32
    return %c0_i32, %c0_i32_0 : i32, i32
  }
  func.func @transform_6(%arg0: i32) -> (i32, i32) {
    %c0_i32 = arith.constant 0 : i32
    %c0_i32_0 = arith.constant 0 : i32
    %c0_i32_1 = arith.constant 0 : i32
    return %c0_i32, %c0_i32_0 : i32, i32
  }
  func.func @transform_7(%arg0: i32) -> (i32, i32) {
    %c0_i32 = arith.constant 0 : i32
    %c0_i32_0 = arith.constant 0 : i32
    return %arg0, %c0_i32 : i32, i32
  }
}

</mosaic_0001>

<bundles_post_ra>
// kernel: actor_forward.1
= control target key start
LH: loop header
LB: loop body
LE: loop exit
PB: predicated region body
PF: predicated region fallthrough
CT: control target
= control target key end

     0   :  { %12 = vsyncpa [#allocation3], 0  ;;  %s568_s24 = smov [#allocation2]   ;;  %s677_s0 = inlined_call_operand.vmem [shape: f32[8,32], index: 0, kind: input, shape index: {}]   ;;  %s678_s1 = inlined_call_operand.vmem [shape: bf16[32,256], index: 1, kind: input, shape index: {}]   ;;  %s679_s2 = inlined_call_operand.vmem [shape: f32[1,256], index: 2, kind: input, shape index: {}]   ;;  %s680_s3 = inlined_call_operand.hbm [shape: bf16[256,128], index: 3, kind: input, shape index: {}]   ;;  %s681_s4 = inlined_call_operand.vmem [shape: f32[1,128], index: 4, kind: input, shape index: {}]   ;;  %s682_s5 = inlined_call_operand.vmem [shape: bf16[128,4], index: 5, kind: input, shape index: {}]   ;;  %s683_s6 = inlined_call_operand.vmem [shape: f32[1,4], index: 6, kind: input, shape index: {}]   ;;  %s684_s7 = inlined_call_operand.vmem [shape: f32[8,4], index: 7, kind: output, shape index: {}]  }
   0x1   :  { %s24_s25 = sshll.u32 %s568_s24, 4  ;;  %s544_s28 = scalar_lea.hbm %s680_s3, 2048  ;;  %s25_s25 = int_to_ptr.vmem [resolvable:$true] %s24_s25 }
   0x2   :  { %p545_p0 = scmp.ne.s32.totalorder %s680_s3, %s544_s28  ;;  %p548_p1 = scmp.lt.u32.totalorder %s544_s28, %s680_s3 }
   0x4   :  { %p550_p2 = pnand %p548_p1, %p545_p0 }
   0x6   :  { %553 = shalt.err (!%p550_p2)
}
   0x7   :  { %s554_s10 = scalar_lea.vmem %s25_s25, 2048  ;;  %p559_p4 = scmp.lt.s32.totalorder %s25_s25, %s25_s25 }
   0x8   :  { %p555_p3 = scmp.ne.s32.totalorder %s25_s25, %s554_s10  ;;  %p560_p5 = scmp.lt.s32.totalorder %s554_s10, %s554_s10 }
   0xa   :  { %p561_p6 = por %p560_p5, %p559_p4 }
   0xc   :  { %p562_p7 = pnand %p561_p6, %p555_p3 }
   0xe   :  { %565 = shalt.err (!%p562_p7)
}
   0xf   :  { %s569_s11 = smov 64   ;;  %s570_s12 = smov 4  }
  0x10   :  { %30 = dma.hbm_to_vmem [thread:$0]  %s680_s3, 2048, %s25_s25, [#allocation3], %s569_s11, %s569_s11, %s570_s12  }
  0x11   :  { %566 = dma.done.wait [#allocation3], 2048  }
  0x12   :  { %567 = vsyncadd [#allocation3], 4294965248  ;;  %v571_v0 = vmov 0   ;;  %v512_v1 = vld [vmem:[%s678_s1 + $0x4] ss:$8 sps:$4 sm:$0xff]   ;;  %vm79_vm0 = vcmask 261120   ;;  %v49_v30 = vlaneseq }
  0x13   :  { %115 = vmatprep.mubr.bf16.mxu0 %v571_v0  ;;  %v514_v2 = vld [vmem:[%s678_s1] ss:$8 sps:$4 sm:$0xff]   ;;  %83 = vmatprep.subr.bf16.mxu0 %v512_v1  ;;  %v515_v3 = vld [vmem:[%s678_s1 + $0x14] ss:$8 sps:$4 sm:$0xff]   ;;  %v517_v4 = vld [vmem:[%s678_s1 + $0x10] ss:$8 sps:$4 sm:$0xff]  }
  0x14   :  { %v41_v5 = vld [vmem:[%s677_s0] sm:$0xff]  ;;  %84 = vmatpush1.bf16.msra.mxu0 %v514_v2  ;;  %v520_v8 = vld [vmem:[#allocation2 + $0x48] sm:$0xff]   ;;  %v522_v11 = vld [vmem:[#allocation2 + $0x50] sm:$0xff]   ;;  %v572_v24 = vmov 0.0   ;;  %v50_v31 = vshrl.u32 %v49_v30, 7  ;;  %vm573_vm1 = vmmov 0  }
  0x15   :  { %v518_v6 = vld [vmem:[#allocation2 + $0x40] sm:$0xff]   ;;  %85 = vmatprep.subr.bf16.mxu0 %v515_v3  ;;  %v42_v9 = vpack.c.bf16 %v41_v5, %v41_v5  ;;  %v521_v10 = vld [vmem:[#allocation2 + $0x8] sm:$0xff]   ;;  %v523_v12 = vld [vmem:[#allocation2 + $0x10] sm:$0xff]   ;;  %vm417_vm2 = vcmask 31744  }
  0x16   :  { %v519_v7 = vld [vmem:[#allocation2] sm:$0xff]   ;;  %455 = vmatprep.subr.bf16.mxu1 %v518_v6  ;;  %v524_v13 = vld [vmem:[#allocation2 + $0x58] sm:$0xff]   ;;  %v528_v17 = vld [vmem:[#allocation2 + $0x68] sm:$0xff]   ;;  %v51_v32 = vsub.s32 0, %v50_v31  ;;  %v55_v34 = vsub.s32 1, %v50_v31 }
  0x17   :  { %456 = vmatpush3.bf16.msra.mxu1 %v519_v7  ;;  %v525_v14 = vld [vmem:[#allocation2 + $0x18] sm:$0xff]   ;;  %v526_v15 = vld [vmem:[#allocation2 + $0x60] sm:$0xff]   ;;  %v529_v18 = vld [vmem:[#allocation2 + $0x28] sm:$0xff]  }
  0x18   :  { %86 = vmatpush1.bf16.msra.mxu0 %v517_v4  ;;  %457 = vmatprep.subr.bf16.mxu1 %v520_v8  ;;  %v527_v16 = vld [vmem:[#allocation2 + $0x20] sm:$0xff]   ;;  %v530_v19 = vld [vmem:[#allocation2 + $0x70] sm:$0xff]   ;;  %v532_v21 = vld [vmem:[#allocation2 + $0x78] sm:$0xff]  }
  0x19   :  { %v531_v20 = vld [vmem:[#allocation2 + $0x30] sm:$0xff]   ;;  %v533_v22 = vld [vmem:[#allocation2 + $0x38] sm:$0xff]   ;;  %v534_v23 = vld [vmem:[%s682_s5] sm:$0xff]   ;;  %486 = vmatprep.subr.bf16.mxu0 %v572_v24 }
  0x1a   :  { %v535_v25 = vld [vmem:[%s682_s5 + $0x8] sm:$0xff]   ;;  %v536_v26 = vld [vmem:[%s682_s5 + $0x10] sm:$0xff]   ;;  %v537_v27 = vld [vmem:[%s682_s5 + $0x18] sm:$0xff]  }
  0x1b   :  { %428 = vmatmul.mubr.msk.bf16.vlgmr.msra.gmra.mrb[0].mxu0 %vm79_vm0, %v42_v9  ;;  %458 = vmatpush3.bf16.msra.mxu1 %v521_v10  ;;  %v538_v28 = vld [vmem:[%s682_s5 + $0x20] sm:$0xff]   ;;  %v539_v29 = vld [vmem:[%s682_s5 + $0x28] sm:$0xff]   ;;  %v540_v47 = vld [vmem:[%s682_s5 + $0x30] sm:$0xff]  }
  0x1c   :  { %459 = vmatprep.subr.bf16.mxu1 %v522_v11  ;;  %487 = vmatpush3.bf16.msra.mxu0 %v534_v23  ;;  %v47_v33 = vld [vmem:[%s679_s2] sm:$0x3]  ;;  %v541_v48 = vld [vmem:[%s682_s5 + $0x38] sm:$0xff]  }
  0x1d   :  { %488 = vmatprep.subr.bf16.mxu0 %v572_v24  ;;  %v52_v35 = vrot.slane %v47_v33, %v51_v32  ;;  %v56_v36 = vrot.slane %v47_v33, %v55_v34  ;;  %502 = vmatprep.mubr.msk.bf16.mxu0 %vm573_vm1, %v572_v24  ;;  %v429_v50 = vld [vmem:[%s681_s4] ss:$0 sm:$0xff] }
  0x1e   :  { %v446_v58 = vld [vmem:[%s683_s6] ss:$0 sm:$0xff] }
  0x1f   :  { %460 = vmatpush3.bf16.msra.mxu1 %v523_v12 }
  0x20   :  { %461 = vmatprep.subr.bf16.mxu1 %v524_v13  ;;  %489 = vmatpush3.bf16.msra.mxu0 %v535_v25 }
  0x21   :  { %490 = vmatprep.subr.bf16.mxu0 %v572_v24 }
  0x23   :  { %462 = vmatpush3.bf16.msra.mxu1 %v525_v14 }
  0x24   :  { %463 = vmatprep.subr.bf16.mxu1 %v526_v15  ;;  %491 = vmatpush3.bf16.msra.mxu0 %v536_v26 }
  0x25   :  { %492 = vmatprep.subr.bf16.mxu0 %v572_v24 }
  0x27   :  { %464 = vmatpush3.bf16.msra.mxu1 %v527_v16 }
  0x28   :  { %465 = vmatprep.subr.bf16.mxu1 %v528_v17  ;;  %493 = vmatpush3.bf16.msra.mxu0 %v537_v27 }
  0x29   :  { %494 = vmatprep.subr.bf16.mxu0 %v572_v24 }
  0x2b   :  { %466 = vmatpush3.bf16.msra.mxu1 %v529_v18 }
  0x2c   :  { %467 = vmatprep.subr.bf16.mxu1 %v530_v19  ;;  %495 = vmatpush3.bf16.msra.mxu0 %v538_v28 }
  0x2d   :  { %496 = vmatprep.subr.bf16.mxu0 %v572_v24 }
  0x2f   :  { %468 = vmatpush3.bf16.msra.mxu1 %v531_v20 }
  0x30   :  { %469 = vmatprep.subr.bf16.mxu1 %v532_v21  ;;  %497 = vmatpush3.bf16.msra.mxu0 %v539_v29 }
  0x31   :  { %498 = vmatprep.subr.bf16.mxu0 %v572_v24 }
  0x33   :  { %470 = vmatpush3.bf16.msra.mxu1 %v533_v22 }
  0x34   :  { %499 = vmatpush3.bf16.msra.mxu0 %v540_v47 }
  0x35   :  { %500 = vmatprep.subr.bf16.mxu0 %v572_v24 }
  0x38   :  { %501 = vmatpush3.bf16.msra.mxu0 %v541_v48 }
  0xee   :  { %v117_v37 = vpop.f32.mrb[0].mxu0 }
  0xef   :  { %v118_v38 = vadd.f32 %v117_v37, %v52_v35  ;;  %v119_v39 = vpop.f32.mrb[1].mxu0 }
  0xf0   :  { %v120_v40 = vadd.f32 %v119_v39, %v56_v36  ;;  %v121_v41 = vpop.f32.mrb[2].mxu0 }
  0xf1   :  { %v124_v42 = vmax.f32 %v118_v38, 0.0  ;;  %v122_v43 = vpop.f32.mrb[3].mxu0 }
  0xf2   :  { %v125_v44 = vmax.f32 %v120_v40, 0.0 }
  0xf3   :  { %v126_v46 = vpack.c.bf16 %v124_v42, %v124_v42 }
  0xf4   :  { %v127_v45 = vpack.c.bf16 %v125_v44, %v125_v44 }
  0xf6   :  { %295 = vmatprep.mubr.bf16.mxu1 %v127_v45 }
  0xf7   :  { %296 = vmatmul.mubr.bf16.vlgmr.msra.gmra.mrb[0].mxu1 %v126_v46 }
 0x1ca   :  { %v471_v49 = vpop.f32.mrb[0].mxu1 }
 0x1cb   :  { %v472_v51 = vpop.f32.mrb[1].mxu1 }
 0x1cc   :  { %v473_v52 = vadd.f32 %v472_v51, %v471_v49  ;;  %v474_v53 = vpop.f32.mrb[2].mxu1 }
 0x1cd   :  { %v475_v54 = vpop.f32.mrb[3].mxu1 }
 0x1ce   :  { %v298_v55 = vadd.f32 %v473_v52, %v429_v50 }
 0x1d0   :  { %v303_v56 = vmax.f32 %v298_v55, 0.0 }
 0x1d2   :  { %v304_v57 = vpack.c.bf16 %v303_v56, %v303_v56 }
 0x1d4   :  { %503 = vmatmul.mubr.bf16.vlgmr.msra.gmra.mrb[4].mxu0 %v304_v57 }
 0x2a7   :  { %v410_v59 = vpop.f32.mrb[4].mxu0 }
 0x2a8   :  { %v411_v60 = vadd.f32 %v446_v58, %v410_v59  ;;  %v504_v61 = vpop.f32.mrb[5].mxu0 }
 0x2a9   :  { %v413_v62 = vpop.f32.mrb[6].mxu0 }
 0x2aa   :  { %542 = vtanh.f32 %v411_v60  ;;  %v505_v63 = vpop.f32.mrb[7].mxu0 }
 0x2b4   :  { %v543_v0 = vpop.eup %542 }
 0x2b5   :  { %418 = vst.msk [vmem:[%s684_s7] sm:$0xff] %vm417_vm2, %v543_v0 }
 0x2b6   :  { %423 = vsyncpa [#allocation3], 1 }

</bundles_post_ra>
